<compile_context>
chip_gen: v7x
topology: tpu7x:2x2x1
jax: 0.10.0
libtpu: 0.0.40
codegen_flags: <defaults>
</compile_context>

<pallas_src>
import functools

import jax
import jax.numpy as jnp
from jax.experimental import pallas as pl
from jax.experimental.pallas import tpu as pltpu


def _round_up(x, m):
    return ((x + m - 1) // m) * m


def _pick_tile(dim, candidates):
    for c in candidates:
        if dim % c == 0:
            return c
    return dim


# ----------------------------------------------------------------------------
# Pallas kernels
# ----------------------------------------------------------------------------

def _mm_kernel(x_ref, w_ref, b_ref, o_ref, acc_ref, *, relu):
    """bf16 GEMM, f32 accumulation in VMEM scratch, bias folded into the
    k==0 init, optional ReLU epilogue, bf16 output."""
    k = pl.program_id(2)

    @pl.when(k == 0)
    def _():
        acc_ref[...] = jnp.broadcast_to(b_ref[...], acc_ref.shape)

    acc_ref[...] += jnp.dot(x_ref[...], w_ref[...],
                            preferred_element_type=jnp.float32)

    @pl.when(k == pl.num_programs(2) - 1)
    def _():
        y = acc_ref[...]
        if relu:
            y = jnp.maximum(y, 0.0)
        o_ref[...] = y.astype(o_ref.dtype)


def _mm_res_kernel(x_ref, w_ref, b_ref, r_ref, o_ref, acc_ref, *, relu):
    """Same as _mm_kernel plus a fused bf16 residual add before the ReLU."""
    k = pl.program_id(2)

    @pl.when(k == 0)
    def _():
        acc_ref[...] = jnp.broadcast_to(b_ref[...], acc_ref.shape)

    acc_ref[...] += jnp.dot(x_ref[...], w_ref[...],
                            preferred_element_type=jnp.float32)

    @pl.when(k == pl.num_programs(2) - 1)
    def _():
        y = acc_ref[...] + r_ref[...].astype(jnp.float32)
        if relu:
            y = jnp.maximum(y, 0.0)
        o_ref[...] = y.astype(o_ref.dtype)


def _maxpool_kernel(a_ref, b_ref, c_ref, o_ref):
    """3x3/s2 max pool, vertical part.  Inputs are the three horizontal-tap
    column-subsampled views with (wo, c) flattened into one lane-dense axis:
    (1, hp, wo*c); output (1, ho, wo*c)."""
    ho = o_ref.shape[1]
    h = jnp.maximum(jnp.maximum(a_ref[...], b_ref[...]), c_ref[...])[0]
    lanes = h.shape[1]
    r = h[0:2 * ho].reshape(ho, 2, lanes)            # padded rows 2h, 2h+1
    top = jnp.maximum(r[:, 0], r[:, 1])
    bot = h[2:2 * ho + 2].reshape(ho, 2, lanes)[:, 0]  # padded row 2h+2
    o_ref[...] = jnp.maximum(top, bot)[None]


def _gap_kernel(x_ref, o_ref):
    # x: (1, H*W, C) bf16 -> f32 mean over the spatial axis -> bf16 out.
    o_ref[...] = jnp.mean(x_ref[...].astype(jnp.float32),
                          axis=1).astype(o_ref.dtype)


def _head_kernel(x_ref, w1_ref, b1_ref, w2_ref, b2_ref, o_ref):
    """Fused resnet.fc + added nn.ReLU + added nn.Linear(1000, 14)."""
    h = jnp.dot(x_ref[...], w1_ref[...], preferred_element_type=jnp.float32)
    h = jnp.maximum(h + b1_ref[...], 0.0)
    o_ref[...] = jnp.dot(h.astype(jnp.bfloat16), w2_ref[...],
                         preferred_element_type=jnp.float32) + b2_ref[...]


# ----------------------------------------------------------------------------
# GEMM wrapper
# ----------------------------------------------------------------------------

def matmul_bias_act(x, w_pad, b_pad, *, relu, residual=None):
    """y = maybe_relu(x @ w + bias [+ residual]) as a padded bf16 (Mp, Np).

    `x`: (M, Kp) bf16, already K-padded to match `w_pad` (Kp, Np) bf16.
    `b_pad`: (1, Np) f32 bias (BN shift folded in).
    """
    M, K = x.shape
    Kp, Np = w_pad.shape
    assert K == Kp, (K, Kp)

    if M >= 1024:
        Mp = _round_up(M, 256)
        tm = _pick_tile(Mp, (512, 256))
    else:
        Mp = _round_up(M, 16)
        tm = _pick_tile(Mp, (256, 128, 64, 32, 16))
    tk = _pick_tile(Kp, (1024, 768, 512, 384, 256, 128))
    tn = _pick_tile(Np, (1024, 512, 256, 128))
    if Mp // tm == 1 and Np // tn == 1 and Np >= 256:
        tn = Np // 2          # keep >= 2 parallel tiles for dual-TC (v7x)

    xb = x.astype(jnp.bfloat16)
    if Mp != M:
        xb = jnp.pad(xb, ((0, Mp - M), (0, 0)))

    args = [xb, w_pad, b_pad]
    in_specs = [
        pl.BlockSpec((tm, tk), lambda i, j, k: (i, k)),
        pl.BlockSpec((tk, tn), lambda i, j, k: (k, j)),
        pl.BlockSpec((1, tn), lambda i, j, k: (0, j)),
    ]
    if residual is not None:
        assert residual.shape[1] == Np
        r = residual.astype(jnp.bfloat16)
        if r.shape[0] != Mp:
            r = jnp.pad(r, ((0, Mp - r.shape[0]), (0, 0)))
        args.append(r)
        in_specs.append(pl.BlockSpec((tm, tn), lambda i, j, k: (i, j)))
        kernel = functools.partial(_mm_res_kernel, relu=relu)
    else:
        kernel = functools.partial(_mm_kernel, relu=relu)

    return pl.pallas_call(
        kernel,
        out_shape=jax.ShapeDtypeStruct((Mp, Np), jnp.bfloat16),
        grid_spec=pltpu.PrefetchScalarGridSpec(
            num_scalar_prefetch=0,
            grid=(Mp // tm, Np // tn, Kp // tk),
            in_specs=in_specs,
            out_specs=pl.BlockSpec((tm, tn), lambda i, j, k: (i, j)),
            scratch_shapes=[pltpu.VMEM((tm, tn), jnp.float32)],
        ),
        compiler_params=pltpu.CompilerParams(
            dimension_semantics=("parallel", "parallel", "arbitrary"),
            vmem_limit_bytes=32 * 1024 * 1024),
    )(*args)


# ----------------------------------------------------------------------------
# Glue: im2col, conv wrapper, pooling wrappers, head wrapper
# ----------------------------------------------------------------------------

def _im2col(x, k, stride, pad, kp):
    """x: NHWC bf16 (channels already padded) ->
    (N*Ho*Wo, kp) bf16 patches (tap-major, channel-minor, K-padded)."""
    n, h, w, c = x.shape
    xpad = jnp.pad(x, ((0, 0), (pad, pad), (pad, pad), (0, 0)))
    ho = (h + 2 * pad - k) // stride + 1
    wo = (w + 2 * pad - k) // stride + 1
    cols = []
    for i in range(k):
        for j in range(k):
            cols.append(xpad[:, i:i + stride * ho:stride,
                             j:j + stride * wo:stride, :])
    kk = k * k * c
    if kp > kk:                     # fold the K pad into the same concat pass
        cols.append(jnp.zeros((n, ho, wo, kp - kk), x.dtype))
    patches = jnp.concatenate(cols, axis=-1)
    return patches.reshape(n * ho * wo, kp), (n, ho, wo)


def conv_bn(x, p, *, relu, residual=None):
    k, s = p['k'], p['stride']
    if k == 1:
        if s > 1:
            x = x[:, ::s, ::s, :]
        n, ho, wo, c = x.shape
        patches = x.reshape(n * ho * wo, c)
    else:
        patches, (n, ho, wo) = _im2col(x, k, s, p['pad'], p['kp'])
    y = matmul_bias_act(patches, p['w'], p['bias'], relu=relu,
                        residual=residual)
    m = n * ho * wo
    return y[:m].reshape(n, ho, wo, p['cout_pad'])


def max_pool_3x3_s2(x):
    n, h, w, c = x.shape
    ho = (h + 2 - 3) // 2 + 1
    wo = (w + 2 - 3) // 2 + 1
    hp = 2 * ho + 2
    wp = 2 * wo + 2
    xp = jnp.pad(x, ((0, 0), (1, hp - h - 1), (1, wp - w - 1), (0, 0)),
                 constant_values=-jnp.inf)
    # Horizontal taps, column-subsampled in the wrapper, (wo, c) flattened
    # into one lane-dense axis (multiple of 128).
    wa = xp[:, :, 0:2 * wo:2, :].reshape(n, hp, wo * c)
    wb = xp[:, :, 1:2 * wo + 1:2, :].reshape(n, hp, wo * c)
    wc = xp[:, :, 2:2 * wo + 2:2, :].reshape(n, hp, wo * c)
    out = pl.pallas_call(
        _maxpool_kernel,
        out_shape=jax.ShapeDtypeStruct((n, ho, wo * c), x.dtype),
        grid=(n,),
        in_specs=[pl.BlockSpec((1, hp, wo * c), lambda i: (i, 0, 0))] * 3,
        out_specs=pl.BlockSpec((1, ho, wo * c), lambda i: (i, 0, 0)),
        compiler_params=pltpu.CompilerParams(
            dimension_semantics=("parallel",)),
    )(wa, wb, wc)
    return out.reshape(n, ho, wo, c)


def global_avg_pool(x):
    n, h, w, c = x.shape
    return pl.pallas_call(
        _gap_kernel,
        out_shape=jax.ShapeDtypeStruct((n, c), x.dtype),
        grid=(n,),
        in_specs=[pl.BlockSpec((1, h * w, c), lambda i: (i, 0, 0))],
        out_specs=pl.BlockSpec((1, c), lambda i: (i, 0)),
        compiler_params=pltpu.CompilerParams(
            dimension_semantics=("parallel",)),
    )(x.reshape(n, h * w, c))


def head_forward(x, fc, head):
    """Fused resnet.fc + nn.ReLU + nn.Linear(1000, 14)."""
    n, d = x.shape
    np1 = fc['w'].shape[1]
    np2 = head['w'].shape[1]
    out = pl.pallas_call(
        _head_kernel,
        out_shape=jax.ShapeDtypeStruct((n, np2), jnp.float32),
        grid=(1,),
        in_specs=[pl.BlockSpec((n, d), lambda i: (0, 0)),
                  pl.BlockSpec((d, np1), lambda i: (0, 0)),
                  pl.BlockSpec((1, np1), lambda i: (0, 0)),
                  pl.BlockSpec((np1, np2), lambda i: (0, 0)),
                  pl.BlockSpec((1, np2), lambda i: (0, 0))],
        out_specs=pl.BlockSpec((n, np2), lambda i: (0, 0)),
        compiler_params=pltpu.CompilerParams(
            vmem_limit_bytes=32 * 1024 * 1024),
    )(x, fc['w'], fc['bias'], head['w'], head['bias'])
    return out[:, :head['cout']]


# ----------------------------------------------------------------------------
# Deterministic synthetic parameters (ResNet50 shapes + added head)
# ----------------------------------------------------------------------------

class _ParamGen:
    def __init__(self, seed=0):
        self._key = jax.random.PRNGKey(seed)
        self._i = 0

    def normal(self, shape, std=0.05):
        self._i += 1
        k = jax.random.fold_in(self._key, self._i)
        return std * jax.random.normal(k, shape, jnp.float32)


def _make_conv(pg, cin, cin_pad, cout, k, stride, pad):
    """Conv+BN (inference) folded into a pre-padded bf16 GEMM weight whose K
    layout matches the channel-padded activation / im2col patch layout."""
    cout_pad = _round_up(cout, 128)
    w = pg.normal((cout, cin, k, k), std=(2.0 / (cin * k * k)) ** 0.5)
    w = jnp.transpose(w, (2, 3, 1, 0))                     # (k, k, cin, cout)
    gamma = 1.0 + pg.normal((cout,), std=0.01)
    beta = pg.normal((cout,), std=0.01)
    mean = pg.normal((cout,), std=0.01)
    var = jnp.abs(1.0 + pg.normal((cout,), std=0.01))
    inv = gamma / jnp.sqrt(var + 1e-5)
    w = w * inv[None, None, None, :]
    bias = beta - mean * inv

    wfull = jnp.zeros((k, k, cin_pad, cout_pad), jnp.float32)
    wfull = wfull.at[:, :, :cin, :cout].set(w)
    kk = k * k * cin_pad
    kp = _round_up(kk, 128)
    w2 = jnp.zeros((kp, cout_pad), jnp.bfloat16)
    w2 = w2.at[:kk, :].set(wfull.reshape(kk, cout_pad).astype(jnp.bfloat16))
    bp = jnp.zeros((1, cout_pad), jnp.float32).at[0, :cout].set(bias)
    return dict(w=w2, bias=bp, k=k, stride=stride, pad=pad,
                cout=cout, cout_pad=cout_pad, kp=kp)


def _make_linear(pg, cin, cin_pad, cout):
    cout_pad = _round_up(cout, 128)
    w = pg.normal((cout, cin), std=(1.0 / cin) ** 0.5).T   # (cin, cout)
    b = pg.normal((cout,), std=0.01)
    wp = jnp.zeros((cin_pad, cout_pad), jnp.bfloat16)
    wp = wp.at[:cin, :cout].set(w.astype(jnp.bfloat16))
    bp = jnp.zeros((1, cout_pad), jnp.float32).at[0, :cout].set(b)
    return dict(w=wp, bias=bp, cout=cout, cout_pad=cout_pad)


def make_params(seed=0):
    pg = _ParamGen(seed)
    params = {'conv1': _make_conv(pg, 3, 3, 64, 7, 2, 3)}
    stage_cfg = [(3, 64, 1), (4, 128, 2), (6, 256, 2), (3, 512, 2)]
    in_c, in_pad = 64, params['conv1']['cout_pad']
    layers = []
    for (nblocks, mid, stride) in stage_cfg:
        out_c = mid * 4
        mid_pad = _round_up(mid, 128)
        blocks = []
        for bi in range(nblocks):
            s = stride if bi == 0 else 1
            blocks.append({
                'conv1': _make_conv(pg, in_c, in_pad, mid, 1, 1, 0),
                'conv2': _make_conv(pg, mid, mid_pad, mid, 3, s, 1),
                'conv3': _make_conv(pg, mid, mid_pad, out_c, 1, 1, 0),
                'downsample': (_make_conv(pg, in_c, in_pad, out_c, 1, s, 0)
                               if bi == 0 else None),
            })
            in_c, in_pad = out_c, _round_up(out_c, 128)
        layers.append(blocks)
    params['layers'] = layers
    params['fc'] = _make_linear(pg, 2048, 2048, 1000)    # resnet50.fc
    params['head'] = _make_linear(pg, 1000, 1024, 14)    # added nn.Linear
    return params


# ----------------------------------------------------------------------------
# Forward pass (== Pretrained.forward)
# ----------------------------------------------------------------------------

def _bottleneck(x, blk):
    if blk['downsample'] is not None:
        identity = conv_bn(x, blk['downsample'], relu=False)
    else:
        identity = x
    out = conv_bn(x, blk['conv1'], relu=True)
    out = conv_bn(out, blk['conv2'], relu=True)
    n, h, w, c = identity.shape
    # Residual add + ReLU fused into the conv3 GEMM epilogue (bf16 identity).
    out = conv_bn(out, blk['conv3'], relu=True,
                  residual=identity.reshape(n * h * w, c))
    return out


def pretrained_forward(params, x_nchw):
    # NCHW (PyTorch) -> NHWC, cast once to bf16; activations stay bf16 and
    # channel-padded for the whole network.
    x = jnp.transpose(x_nchw, (0, 2, 3, 1)).astype(jnp.bfloat16)
    x = conv_bn(x, params['conv1'], relu=True)
    x = max_pool_3x3_s2(x)
    for blocks in params['layers']:
        for blk in blocks:
            x = _bottleneck(x, blk)
    x = global_avg_pool(x)                                   # (N, 2048) bf16
    # resnet50.fc + added nn.ReLU + added nn.Linear(1000, 14), one kernel.
    return head_forward(x, params['fc'], params['head'])     # (N, 14) f32


# TODO(synk): training loop / optimizer / checkpoint save / TensorBoard /
# embedding-dict JSON dump from the PyTorch module are host-side utilities
# with no Pallas equivalent; only the forward pass is implemented (with
# synthetic weights standing in for the pretrained ImageNet checkpoint).

if __name__ == "__main__":
    key = jax.random.PRNGKey(0)
    x = jax.random.normal(key, (2, 3, 32, 32), jnp.float32)   # NCHW input
    params = make_params(seed=0)
    out = pretrained_forward(params, x)
    out = jax.block_until_ready(out)
    assert out.shape == (2, 14) and out.dtype == jnp.float32
    assert bool(jnp.all(jnp.isfinite(out)))
    print("KERNEL_OK")
</pallas_src>

<mosaic_0001>
module attributes {stable_mosaic.version = 11 : i64} {
  func.func @_mm_kernel(%arg0: i32, %arg1: i32, %arg2: i32, %arg3: memref<256x256xbf16, #tpu.memory_space<vmem>>, %arg4: memref<256x128xbf16, #tpu.memory_space<vmem>>, %arg5: memref<1x128xf32, #tpu.memory_space<vmem>>, %arg6: memref<256x128xbf16, #tpu.memory_space<vmem>>, %arg7: memref<256x128xf32, #tpu.memory_space<vmem>>) attributes {dimension_semantics = [#tpu.dimension_semantics<parallel>, #tpu.dimension_semantics<parallel>, #tpu.dimension_semantics<arbitrary>], iteration_bounds = array<i64: 2, 1, 1>, scalar_prefetch = 0 : i64, scratch_operands = 1 : i64, tpu.core_type = #tpu.core_type<tc>, window_params = [{transform_indices = @transform_0, window_bounds = array<i64: 256, 256>}, {transform_indices = @transform_1, window_bounds = array<i64: 256, 128>}, {transform_indices = @transform_2, window_bounds = array<i64: 1, 128>}, {transform_indices = @transform_3, window_bounds = array<i64: 256, 128>}]} {
    %c0_i32 = arith.constant 0 : i32
    %0 = arith.cmpi eq, %arg2, %c0_i32 : i32
    %1 = arith.extui %0 : i1 to i32
    %c0_i32_0 = arith.constant 0 : i32
    %2 = arith.cmpi ne, %1, %c0_i32_0 : i32
    scf.if %2 {
      %c0_10 = arith.constant 0 : index
      %c0_11 = arith.constant 0 : index
      %12 = vector.load %arg5[%c0_10, %c0_11] : memref<1x128xf32, #tpu.memory_space<vmem>>, vector<1x128xf32>
      %13 = vector.shape_cast %12 : vector<1x128xf32> to vector<1x128xf32>
      %14 = vector.broadcast %13 : vector<1x128xf32> to vector<256x128xf32>
      %c0_12 = arith.constant 0 : index
      %c0_13 = arith.constant 0 : index
      %15 = vector.load %arg7[%c0_12, %c0_13] : memref<256x128xf32, #tpu.memory_space<vmem>>, vector<256x128xf32>
      tpu.vector_store %arg7[%c0_12, %c0_13], %14 {strides = array<i32>} : memref<256x128xf32, #tpu.memory_space<vmem>>, vector<256x128xf32>,
    } else {
    }
    %c0 = arith.constant 0 : index
    %c0_1 = arith.constant 0 : index
    %3 = vector.load %arg7[%c0, %c0_1] : memref<256x128xf32, #tpu.memory_space<vmem>>, vector<256x128xf32>
    %c0_2 = arith.constant 0 : index
    %c0_3 = arith.constant 0 : index
    %4 = vector.load %arg3[%c0_2, %c0_3] : memref<256x256xbf16, #tpu.memory_space<vmem>>, vector<256x256xbf16>
    %c0_4 = arith.constant 0 : index
    %c0_5 = arith.constant 0 : index
    %5 = vector.load %arg4[%c0_4, %c0_5] : memref<256x128xbf16, #tpu.memory_space<vmem>>, vector<256x128xbf16>
    %cst = arith.constant dense<0.000000e+00> : vector<256x128xf32>
    %6 = tpu.matmul %4, %5, %cst {dimension_numbers = #tpu.dot_dimension_numbers<[1], [0], [0], [1], [0, 0, 1, 1], [], []>} : vector<256x256xbf16>, vector<256x128xbf16>, vector<256x128xf32> -> vector<256x128xf32>
    %7 = arith.addf %3, %6 : vector<256x128xf32>
    %c0_6 = arith.constant 0 : index
    %c0_7 = arith.constant 0 : index
    %8 = vector.load %arg7[%c0_6, %c0_7] : memref<256x128xf32, #tpu.memory_space<vmem>>, vector<256x128xf32>
    tpu.vector_store %arg7[%c0_6, %c0_7], %7 {strides = array<i32>} : memref<256x128xf32, #tpu.memory_space<vmem>>, vector<256x128xf32>,
    %c0_i32_8 = arith.constant 0 : i32
    %9 = arith.cmpi eq, %arg2, %c0_i32_8 : i32
    %10 = arith.extui %9 : i1 to i32
    %c0_i32_9 = arith.constant 0 : i32
    %11 = arith.cmpi ne, %10, %c0_i32_9 : i32
    scf.if %11 {
      %c0_10 = arith.constant 0 : index
      %c0_11 = arith.constant 0 : index
      %12 = vector.load %arg7[%c0_10, %c0_11] : memref<256x128xf32, #tpu.memory_space<vmem>>, vector<256x128xf32>
      %cst_12 = arith.constant 0.000000e+00 : f32
      %13 = vector.broadcast %cst_12 : f32 to vector<256x128xf32>
      %14 = arith.maximumf %12, %13 : vector<256x128xf32>
      %15 = arith.truncf %14 : vector<256x128xf32> to vector<256x128xbf16>
      %c0_13 = arith.constant 0 : index
      %c0_14 = arith.constant 0 : index
      %16 = vector.load %arg6[%c0_13, %c0_14] : memref<256x128xbf16, #tpu.memory_space<vmem>>, vector<256x128xbf16>
      tpu.vector_store %arg6[%c0_13, %c0_14], %15 {strides = array<i32>} : memref<256x128xbf16, #tpu.memory_space<vmem>>, vector<256x128xbf16>,
    } else {
    }
    return
  }
  func.func @transform_0(%arg0: i32, %arg1: i32, %arg2: i32) -> (i32, i32) {
    %c0_i32 = arith.constant 0 : i32
    return %arg0, %arg2 : i32, i32
  }
  func.func @transform_1(%arg0: i32, %arg1: i32, %arg2: i32) -> (i32, i32) {
    %c0_i32 = arith.constant 0 : i32
    return %arg2, %arg1 : i32, i32
  }
  func.func @transform_2(%arg0: i32, %arg1: i32, %arg2: i32) -> (i32, i32) {
    %c0_i32 = arith.constant 0 : i32
    %c0_i32_0 = arith.constant 0 : i32
    return %c0_i32, %arg1 : i32, i32
  }
  func.func @transform_3(%arg0: i32, %arg1: i32, %arg2: i32) -> (i32, i32) {
    %c0_i32 = arith.constant 0 : i32
    return %arg0, %arg1 : i32, i32
  }
}

</mosaic_0001>

<bundles_post_ra>
// kernel: tpu_custom_call.1
= control target key start
LH: loop header
LB: loop body
LE: loop exit
PB: predicated region body
PF: predicated region fallthrough
CT: control target
= control target key end

     0   :  { %8 = vsyncpa [#allocation4], 0  ;;  %s2223_s0 = inlined_call_operand.hbm [shape: bf16[512,256], index: 0, kind: input, shape index: {}]   ;;  %s2224_s1 = inlined_call_operand.hbm [shape: bf16[256,128], index: 1, kind: input, shape index: {}]   ;;  %s2225_s2 = inlined_call_operand.vmem [shape: f32[1,128], index: 2, kind: input, shape index: {}]   ;;  %s2226_s3 = inlined_call_operand.hbm [shape: bf16[512,128], index: 3, kind: output, shape index: {}]  }
   0x1   :  { %10 = vsyncpa [#allocation4 + $0x1], 0 }
   0x2   :  { %11 = vsyncpa [#allocation7], 0 }
   0x3   :  { %12 = vsyncpa [#allocation5], 0 }
   0x4   :  { %14 = vsyncpa [#allocation5 + $0x1], 0  ;;  %s1913_s12 = smov 0   ;;  %s1915_s13 = smov 0  }
   0x5   :  { %s1917_s14 = smov 0   ;;  %s1919_s15 = smov 0  }
   0x6   :  { %s1921_s16 = smov 0   ;;  %s1923_s17 = smov 0  }
   0x7 LB: > { %s1237_s18 = sadd.s32 4294967295, %s1882_s17   ;;  %s1238_s19 = sadd.s32 4294967294, %s1882_s17   ;;  %s1882_s17 = sphi %s1923_s17, %s20_s17   ;;  %s1878_s16 = sphi %s1921_s16, %s2250_s16   ;;  %s1874_s15 = sphi %s1919_s15, %s2249_s15   ;;  %s1870_s14 = sphi %s1917_s14, %s2248_s14   ;;  %s1866_s13 = sphi %s1915_s13, %s2247_s13   ;;  %s1862_s12 = sphi %s1913_s12, %s2246_s12  }
   0x8   : > { %p61_p0 = scmp.ne.s32.totalorder %s1866_s13, %s1862_s12  ;;  %p1947_p1 = scmp.eq.s32.totalorder %s1237_s18, 0 }
   0x9   : > { %p1951_p2 = scmp.eq.s32.totalorder %s1237_s18, 1  ;;  %p147_p3 = scmp.eq.s32.totalorder %s1238_s19, 1 }
   0xa   : > { %s2231_s20 = scalar_select %p1947_p1, 1, 0 }
   0xb   : > { %s2232_s21 = scalar_select %p1951_p2, 1, 0 }
   0xc   : > { %p1957_p4 = por %p1947_p1, %p61_p0  ;;  %p1239_p5 = scmp.ge.s32.totalorder %s1882_s17, 1 }
   0xd   : > { %p1962_p6 = por %p147_p3, %p61_p0  ;;  %p154_p7 = scmp.lt.s32.totalorder %s1882_s17, 3 }
   0xe   : > { %s2233_s22 = scalar_select %p1957_p4, 1, 0 }
   0xf   : > { %s2234_s23 = scalar_select %p1962_p6, 1, 0 }
  0x10   : > { %p1967_p8 = pnand %p1239_p5, %p154_p7  ;;  %s1884_s25 = smov [#allocation6]  }
  0x11   : > { %s170_s26 = sshll.u32 %s1884_s25, 4  ;;  %s39_s28 = sadd.s32 1, %s1878_s16  ;;  %s171_s26 = int_to_ptr.vmem [resolvable:$true] %s170_s26 }
  0x12   : > { %s2235_s24 = scalar_select %p1967_p8, 1, 0 }
  0x13   : > { %p1603_p9 = pneg %p1967_p8  ;;  %s1738_s4 = scalar_lea.hbm %s2224_s1, 2048 }
  0x14   : > { %p1739_p12 = scmp.ne.s32.totalorder %s2224_s1, %s1738_s4  ;;  %p1745_p5 = scmp.lt.u32.totalorder %s1738_s4, %s2224_s1 }
  0x15   : > { %p1976_p11 = pnand %p1603_p9, %p1947_p1 }
  0x17   : > { %p1740_p13 = pneg %p1976_p11 }
  0x19   : > { %p1741_p0 = pnand %p1740_p13, %p1739_p12 }
  0x1b   : > { %p1742_p3 = pneg %p1741_p0 }
  0x1d   : > { %p1747_p7 = pnand %p1745_p5, %p1742_p3 }
  0x1f   : > { %1750 = shalt.err (!%p1747_p7)
}
  0x20   : > { %s1751_s9 = scalar_lea.vmem %s171_s26, 2048  ;;  %p1759_p1 = scmp.lt.s32.totalorder %s171_s26, %s171_s26 }
  0x21   : > { %p1752_p9 = scmp.ne.s32.totalorder %s171_s26, %s1751_s9  ;;  %p1760_p4 = scmp.lt.s32.totalorder %s1751_s9, %s1751_s9 }
  0x23   : > { %p1754_p10 = pnand %p1752_p9, %p1740_p13  ;;  %p1761_p8 = por %p1760_p4, %p1759_p1 }
  0x25   : > { %p1755_p6 = pneg %p1754_p10 }
  0x27   : > { %p1762_p2 = pnand %p1761_p8, %p1755_p6 }
  0x29   : > { %1765 = shalt.err (!%p1762_p2)
}
  0x2a   : > { %s1885_s10 = smov 64   ;;  %s1886_s11 = smov 4  }
  0x2b   : > { %1606 = dma.hbm_to_vmem [thread:$0]  (!%p1976_p11), %s2224_s1, 2048, %s171_s26, [#allocation7], %s1885_s10, %s1885_s10, %s1886_s11  }
  0x2c   : > { %p41_p1 = scmp.ge.s32.totalorder %s39_s28, 2  ;;  %s48_s25 = sadd.s32 1, %s1870_s14 }
  0x2d   : > { %p55_p2 = scmp.ne.s32.totalorder %s1870_s14, %s1866_s13  ;;  %p56_p4 = scmp.eq.s32.totalorder %s1882_s17, 0 }
  0x2e   : > { %s2252_s28 = smov (%p41_p1, %s39_s28), 0  ;;  %p2238_p8 = scmp.ne.s32.totalorder %s2232_s21, 0 }
  0x2f   : > { %p2003_p6 = por %p56_p4, %p55_p2  ;;  %s43_s27 = ssub.s32 %s1878_s16, %s2252_s28 }
  0x30   : > { %p2009_p10 = por %p2238_p8, %p55_p2  ;;  %p1616_p12 = scmp.lt.s32.totalorder %s1882_s17, 2 }
  0x31   : > { %p46_p11 = scmp.eq.s32.totalorder %s43_s27, 0  ;;  %s190_s26 = sand.u32 1, %s1870_s14  }
  0x32   : > { %s1243_s4 = sshll.u32 %s190_s26, 8  ;;  %s1338_s6 = sshll.u32 %s1878_s16, 12 }
  0x33   : > { %s2018_s5 = scalar_select %p46_p11, %s1870_s14, %s48_s25  }
  0x34   : > { %s2024_s9 = scalar_lea.hbm %s2223_s0, %s1338_s6  ;;  %s194_s21 = scalar_lea.vmem [#allocation3], %s1243_s4 }
  0x35   : > { %s204_s10 = sshll.u32 %s194_s21, 4  ;;  %p2030_p13 = pnand %p1616_p12, %p2003_p6  ;;  %s2026_s10 = int_to_ptr.vmem [resolvable:$true] %s204_s10 }
  0x36   : > { %s2034_s18 = scalar_lea.sflag [#allocation4], %s190_s26  ;;  %s1766_s19 = scalar_lea.hbm %s2024_s9, 4096 }
  0x37   : > { %p1767_p0 = scmp.ne.s32.totalorder %s2024_s9, %s1766_s19  ;;  %p1768_p3 = pneg %p2030_p13 }
  0x38   : > { %s1771_s29 = scalar_lea.hbm %s2223_s0, 8192  ;;  %p1772_p9 = scmp.lt.u32.totalorder %s2024_s9, %s2223_s0 }
  0x39   : > { %p1769_p5 = pnand %p1768_p3, %p1767_p0  ;;  %p1773_p1 = scmp.lt.u32.totalorder %s1771_s29, %s1766_s19 }
  0x3a   : > { %p1775_p4 = scmp.lt.u32.totalorder %s1766_s19, %s2024_s9 }
  0x3b   : > { %p1770_p7 = pneg %p1769_p5  ;;  %p1774_p2 = por %p1773_p1, %p1772_p9 }
  0x3d   : > { %p1776_p6 = por %p1775_p4, %p1774_p2 }
  0x3f   : > { %p1777_p8 = pnand %p1776_p6, %p1770_p7 }
  0x41   : > { %1780 = shalt.err (!%p1777_p8)
}
  0x42   : > { %s1781_s26 = scalar_lea.vmem %s2026_s10, 4096  ;;  %s1887_s7 = smov [#allocation3]  }
  0x43   : > { %p1782_p12 = scmp.ne.s32.totalorder %s2026_s10, %s1781_s26  ;;  %s1786_s8 = sshll.u32 %s1887_s7, 4  ;;  %s1787_s8 = int_to_ptr.vmem [resolvable:$false] %s1786_s8 }
  0x44   : > { %s1788_s21 = scalar_lea.vmem %s1787_s8, 8192  ;;  %p1789_p5 = scmp.lt.s32.totalorder %s2026_s10, %s1787_s8 }
  0x45   : > { %p1784_p11 = pnand %p1782_p12, %p1768_p3  ;;  %p1790_p9 = scmp.lt.s32.totalorder %s1788_s21, %s1781_s26 }
  0x47   : > { %p1785_p0 = pneg %p1784_p11  ;;  %p1791_p1 = por %p1790_p9, %p1789_p5 }
  0x49   : > { %p1792_p2 = pnand %p1791_p1, %p1785_p0 }
  0x4b   : > { %1795 = shalt.err (!%p1792_p2)
}
  0x4c   : > { %s1888_s19 = smov 128   ;;  %s1889_s25 = smov 8  }
  0x4d   : > { %1610 = dma.hbm_to_vmem [thread:$0]  (!%p2030_p13), %s2024_s9, 4096, %s2026_s10, %s2034_s18, %s1888_s19, %s1888_s19, %s1889_s25  }
  0x4e   : > { %p2241_p3 = scmp.ne.s32.totalorder %s2235_s24, 0 }
  0x4f   : > { %s2065_s27 = sand.u32 (!%p2241_p3), 1, %s1866_s13   ;;  %p2242_p7 = scmp.ne.s32.totalorder (!%p2241_p3), %s2233_s22, 0 }
  0x50   : > { %216 = sbr.rel (%p2241_p3) target bundleno = 419 (0x1a3), region = 32  ;;  %s1248_s29 = sshll.u32 (!%p2241_p3), %s2065_s27, 8 }
  0x51   : > { %s219_s4 = scalar_lea.sflag (!%p2241_p3), [#allocation4], %s2065_s27  ;;  %s2069_s6 = scalar_lea.vmem (!%p2241_p3), [#allocation3], %s1248_s29 }
  0x57   : > { %1849 = dma.done.wait (%p2242_p7), %s219_s4, 4096  }
  0x58   : > { %1851 = vsyncadd (%p2242_p7), %s219_s4, 4294963200  ;;  %p2243_p13 = scmp.ne.s32.totalorder %s2231_s20, 0 }
  0x5a   : > { %1853 = dma.done.wait (%p2243_p13), [#allocation7], 2048  }
  0x5b   : > { %1855 = vsyncadd (%p2243_p13), [#allocation7], 4294965248  ;;  %v1674_v0 = vld [vmem:[#allocation6 + $0x40] sm:$0xff]   ;;  %v1676_v2 = vld [vmem:[#allocation6 + $0x48] sm:$0xff]   ;;  %s1250_s24 = sshll.u32 %s2065_s27, 7  ;;  %s1371_s10 = sshll.u32 %s1874_s15, 11 }
  0x5c   : > { %v1675_v1 = vld [vmem:[#allocation6] sm:$0xff]   ;;  %1467 = vmatprep.subr.bf16.mxu0 %v1674_v0  ;;  %1579 = vmatprep.subr.bf16.mxu1 %v1674_v0  ;;  %v1677_v3 = vld [vmem:[#allocation6 + $0x8] sm:$0xff]   ;;  %v1678_v4 = vld [vmem:[#allocation6 + $0x50] sm:$0xff]   ;;  %s2121_s9 = scalar_lea.vmem [#allocation8], %s1250_s24  ;;  %s2170_s7 = scalar_lea.hbm %s2226_s3, %s1371_s10 }
  0x5d   : > { %1468 = vmatpush3.bf16.msra.mxu0 %v1675_v1  ;;  %1587 = vmatpush3.bf16.msra.mxu1 %v1675_v1  ;;  %v1679_v5 = vld [vmem:[#allocation6 + $0x10] sm:$0xff]   ;;  %v1680_v6 = vld [vmem:[#allocation6 + $0x58] sm:$0xff]   ;;  %v1682_v8 = vld [vmem:[#allocation6 + $0x60] sm:$0xff]   ;;  %s1122_s11 = sshll.u32 %s2121_s9, 4  ;;  %s1108_s15 = scalar_lea.sflag [#allocation5], %s2065_s27  ;;  %s2172_s11 = int_to_ptr.vmem [resolvable:$true] %s1122_s11 }
  0x5e   : > { %1469 = vmatprep.subr.bf16.mxu0 %v1676_v2  ;;  %1580 = vmatprep.subr.bf16.mxu1 %v1676_v2  ;;  %v1681_v7 = vld [vmem:[#allocation6 + $0x18] sm:$0xff]   ;;  %v1683_v9 = vld [vmem:[#allocation6 + $0x20] sm:$0xff]   ;;  %v1684_v10 = vld [vmem:[#allocation6 + $0x68] sm:$0xff]   ;;  %s1796_s8 = scalar_lea.vmem %s2172_s11, 2048  ;;  %s1890_s21 = smov [#allocation8]  }
  0x5f   : > { %v1692_v11 = vld [vmem:[%s2069_s6 + $0x4] ss:$8 sps:$4 sm:$0xff]   ;;  %v1686_v14 = vld [vmem:[#allocation6 + $0x70] sm:$0xff]   ;;  %v1688_v16 = vld [vmem:[#allocation6 + $0x78] sm:$0xff]   ;;  %p1797_p4 = scmp.ne.s32.totalorder %s2172_s11, %s1796_s8  ;;  %s1800_s19 = sshll.u32 %s1890_s21, 4  ;;  %s1801_s19 = int_to_ptr.vmem [resolvable:$false] %s1800_s19 }
  0x60   : > { %v1695_v12 = vld [vmem:[%s2069_s6 + $0x84] ss:$8 sps:$4 sm:$0xff]   ;;  %687 = vmatprep.mubr.bf16.mxu0 %v1692_v11  ;;  %v1687_v15 = vld [vmem:[#allocation6 + $0x30] sm:$0xff]   ;;  %v1689_v17 = vld [vmem:[#allocation6 + $0x38] sm:$0xff]   ;;  %s1802_s25 = scalar_lea.vmem %s1801_s19, 4096  ;;  %p1803_p12 = scmp.lt.s32.totalorder %s2172_s11, %s1801_s19 }
  0x61   : > { %1470 = vmatpush3.bf16.msra.mxu0 %v1677_v3  ;;  %1588 = vmatpush3.bf16.msra.mxu1 %v1677_v3  ;;  %v1685_v13 = vld [vmem:[#allocation6 + $0x28] sm:$0xff]   ;;  %v1696_v20 = vld [vmem:[%s2069_s6 + $0x14] ss:$8 sps:$4 sm:$0xff]   ;;  %v1700_v22 = vld [vmem:[%s2069_s6 + $0x10] ss:$8 sps:$4 sm:$0xff]   ;;  %p1798_p6 = pnand %p1797_p4, %p2009_p10  ;;  %p1804_p11 = scmp.lt.s32.totalorder %s1802_s25, %s1796_s8 }
  0x62   : > { %1471 = vmatprep.subr.bf16.mxu0 %v1678_v4  ;;  %1581 = vmatprep.subr.bf16.mxu1 %v1678_v4  ;;  %v1690_v18 = vld [vmem:[%s2069_s6] ss:$8 sps:$4 sm:$0xff]   ;;  %v1698_v21 = vld [vmem:[%s2069_s6 + $0x94] ss:$8 sps:$4 sm:$0xff]   ;;  %v1701_v23 = vld [vmem:[%s2069_s6 + $0x90] ss:$8 sps:$4 sm:$0xff]  }
  0x63   : > { %751 = vmatprep.mubr.bf16.mxu1 %v1695_v12  ;;  %v1693_v19 = vld [vmem:[%s2069_s6 + $0x80] ss:$8 sps:$4 sm:$0xff]   ;;  %v1702_v24 = vld [vmem:[%s2069_s6 + $0x24] ss:$8 sps:$4 sm:$0xff]   ;;  %v1708_v28 = vld [vmem:[%s2069_s6 + $0x34] ss:$8 sps:$4 sm:$0xff]   ;;  %p1799_p8 = pneg %p1798_p6  ;;  %p1805_p0 = por %p1804_p11, %p1803_p12 }
  0x64   : > { %v1704_v25 = vld [vmem:[%s2069_s6 + $0xa4] ss:$8 sps:$4 sm:$0xff]   ;;  %v1706_v26 = vld [vmem:[%s2069_s6 + $0x20] ss:$8 sps:$4 sm:$0xff]   ;;  %v1710_v29 = vld [vmem:[%s2069_s6 + $0xb4] ss:$8 sps:$4 sm:$0xff]  }
  0x65   : > { %1472 = vmatpush3.bf16.msra.mxu0 %v1679_v5  ;;  %1589 = vmatpush3.bf16.msra.mxu1 %v1679_v5  ;;  %v1707_v27 = vld [vmem:[%s2069_s6 + $0xa0] ss:$8 sps:$4 sm:$0xff]   ;;  %v1712_v30 = vld [vmem:[%s2069_s6 + $0x30] ss:$8 sps:$4 sm:$0xff]   ;;  %v1714_v32 = vld [vmem:[%s2069_s6 + $0x44] ss:$8 sps:$4 sm:$0xff]   ;;  %p1806_p5 = pnand %p1805_p0, %p1799_p8 }
  0x66   : > { %1473 = vmatprep.subr.bf16.mxu0 %v1680_v6  ;;  %1582 = vmatprep.subr.bf16.mxu1 %v1680_v6  ;;  %v1713_v31 = vld [vmem:[%s2069_s6 + $0xb0] ss:$8 sps:$4 sm:$0xff]   ;;  %v1716_v33 = vld [vmem:[%s2069_s6 + $0xc4] ss:$8 sps:$4 sm:$0xff]   ;;  %v1718_v34 = vld [vmem:[%s2069_s6 + $0x40] ss:$8 sps:$4 sm:$0xff]  }
  0x67   : > { %v1719_v35 = vld [vmem:[%s2069_s6 + $0xc0] ss:$8 sps:$4 sm:$0xff]   ;;  %v1720_v36 = vld [vmem:[%s2069_s6 + $0x54] ss:$8 sps:$4 sm:$0xff]   ;;  %v1724_v38 = vld [vmem:[%s2069_s6 + $0x50] ss:$8 sps:$4 sm:$0xff]  }
  0x68   : > { %v1722_v37 = vld [vmem:[%s2069_s6 + $0xd4] ss:$8 sps:$4 sm:$0xff]   ;;  %v1725_v39 = vld [vmem:[%s2069_s6 + $0xd0] ss:$8 sps:$4 sm:$0xff]   ;;  %v1726_v40 = vld [vmem:[%s2069_s6 + $0x64] ss:$8 sps:$4 sm:$0xff]  }
  0x69   : > { %1474 = vmatpush3.bf16.msra.mxu0 %v1681_v7  ;;  %1590 = vmatpush3.bf16.msra.mxu1 %v1681_v7  ;;  %v1728_v41 = vld [vmem:[%s2069_s6 + $0xe4] ss:$8 sps:$4 sm:$0xff]   ;;  %v1730_v42 = vld [vmem:[%s2069_s6 + $0x60] ss:$8 sps:$4 sm:$0xff]   ;;  %v1732_v44 = vld [vmem:[%s2069_s6 + $0x74] ss:$8 sps:$4 sm:$0xff]  }
  0x6a   : > { %1475 = vmatprep.subr.bf16.mxu0 %v1682_v8  ;;  %1583 = vmatprep.subr.bf16.mxu1 %v1682_v8  ;;  %v1731_v43 = vld [vmem:[%s2069_s6 + $0xe0] ss:$8 sps:$4 sm:$0xff]   ;;  %v1734_v45 = vld [vmem:[%s2069_s6 + $0xf4] ss:$8 sps:$4 sm:$0xff]   ;;  %v1736_v46 = vld [vmem:[%s2069_s6 + $0x70] ss:$8 sps:$4 sm:$0xff]  }
  0x6b   : > { %v1737_v47 = vld [vmem:[%s2069_s6 + $0xf0] ss:$8 sps:$4 sm:$0xff]   ;;  %v2114_v50 = vld [vmem:[%s2225_s2] ss:$0 sm:$0xff] }
  0x6d   : > { %1476 = vmatpush3.bf16.msra.mxu0 %v1683_v9  ;;  %1591 = vmatpush3.bf16.msra.mxu1 %v1683_v9 }
  0x6e   : > { %1477 = vmatprep.subr.bf16.mxu0 %v1684_v10  ;;  %1584 = vmatprep.subr.bf16.mxu1 %v1684_v10 }
  0x71   : > { %1478 = vmatpush3.bf16.msra.mxu0 %v1685_v13  ;;  %1592 = vmatpush3.bf16.msra.mxu1 %v1685_v13 }
  0x72   : > { %1479 = vmatprep.subr.bf16.mxu0 %v1686_v14  ;;  %1585 = vmatprep.subr.bf16.mxu1 %v1686_v14 }
  0x75   : > { %1480 = vmatpush3.bf16.msra.mxu0 %v1687_v15  ;;  %1593 = vmatpush3.bf16.msra.mxu1 %v1687_v15 }
  0x76   : > { %1481 = vmatprep.subr.bf16.mxu0 %v1688_v16  ;;  %1586 = vmatprep.subr.bf16.mxu1 %v1688_v16 }
  0x79   : > { %1482 = vmatpush3.bf16.msra.mxu0 %v1689_v17  ;;  %1594 = vmatpush3.bf16.msra.mxu1 %v1689_v17 }
  0x7c   : > { %688 = vmatmul.mubr.bf16.vlgmr.msra.gmra.mrb[0].mxu0 %v1690_v18  ;;  %752 = vmatmul.mubr.bf16.vlgmr.msra.gmra.mrb[0].mxu1 %v1693_v19 }
  0x7d   : > { %695 = vmatprep.mubr.bf16.mxu0 %v1696_v20  ;;  %759 = vmatprep.mubr.bf16.mxu1 %v1698_v21 }
  0x84   : > { %696 = vmatmul.mubr.bf16.gmra.mrb[4].mxu0 %v1700_v22  ;;  %760 = vmatmul.mubr.bf16.gmra.mrb[4].mxu1 %v1701_v23 }
  0x85   : > { %703 = vmatprep.mubr.bf16.mxu0 %v1702_v24  ;;  %767 = vmatprep.mubr.bf16.mxu1 %v1704_v25 }
  0x8c   : > { %704 = vmatmul.mubr.bf16.gmra.mrb[8].mxu0 %v1706_v26  ;;  %768 = vmatmul.mubr.bf16.gmra.mrb[8].mxu1 %v1707_v27 }
  0x8d   : > { %711 = vmatprep.mubr.bf16.mxu0 %v1708_v28  ;;  %775 = vmatprep.mubr.bf16.mxu1 %v1710_v29 }
  0x94   : > { %712 = vmatmul.mubr.bf16.gmra.mrb[12].mxu0 %v1712_v30  ;;  %776 = vmatmul.mubr.bf16.gmra.mrb[12].mxu1 %v1713_v31 }
  0x95   : > { %719 = vmatprep.mubr.bf16.mxu0 %v1714_v32  ;;  %783 = vmatprep.mubr.bf16.mxu1 %v1716_v33 }
  0x9c   : > { %720 = vmatmul.mubr.bf16.gmra.mrb[16].mxu0 %v1718_v34  ;;  %784 = vmatmul.mubr.bf16.gmra.mrb[16].mxu1 %v1719_v35 }
  0x9d   : > { %727 = vmatprep.mubr.bf16.mxu0 %v1720_v36  ;;  %791 = vmatprep.mubr.bf16.mxu1 %v1722_v37 }
  0xa4   : > { %728 = vmatmul.mubr.bf16.gmra.mrb[20].mxu0 %v1724_v38  ;;  %792 = vmatmul.mubr.bf16.gmra.mrb[20].mxu1 %v1725_v39 }
  0xa5   : > { %735 = vmatprep.mubr.bf16.mxu0 %v1726_v40  ;;  %799 = vmatprep.mubr.bf16.mxu1 %v1728_v41 }
  0xac   : > { %736 = vmatmul.mubr.bf16.gmra.mrb[24].mxu0 %v1730_v42  ;;  %800 = vmatmul.mubr.bf16.gmra.mrb[24].mxu1 %v1731_v43 }
  0xad   : > { %743 = vmatprep.mubr.bf16.mxu0 %v1732_v44  ;;  %807 = vmatprep.mubr.bf16.mxu1 %v1734_v45 }
  0xb4   : > { %744 = vmatmul.mubr.bf16.gmra.mrb[28].mxu0 %v1736_v46  ;;  %808 = vmatmul.mubr.bf16.gmra.mrb[28].mxu1 %v1737_v47 }
 0x14f   : > { %v1483_v48 = vpop.f32.mrb[0].mxu0  ;;  %v1531_v49 = vpop.f32.mrb[0].mxu1 }
 0x150   : > { %v1484_v51 = vpop.f32.mrb[1].mxu0  ;;  %v1532_v52 = vpop.f32.mrb[1].mxu1 }
 0x151   : > { %v1485_v53 = vadd.f32 %v1484_v51, %v1483_v48  ;;  %v1533_v54 = vadd.f32 %v1532_v52, %v1531_v49  ;;  %v1486_v55 = vpop.f32.mrb[2].mxu0  ;;  %v1534_v56 = vpop.f32.mrb[2].mxu1 }
 0x152   : > { %v1487_v57 = vpop.f32.mrb[3].mxu0  ;;  %v1535_v58 = vpop.f32.mrb[3].mxu1 }
 0x153   : > { %v816_v59 = vadd.f32 %v1485_v53, %v2114_v50  ;;  %v832_v60 = vadd.f32 %v1533_v54, %v2114_v50  ;;  %v1488_v61 = vadd.f32 %v1487_v57, %v1486_v55  ;;  %v1536_v62 = vadd.f32 %v1535_v58, %v1534_v56 }
 0x155   : > { %v817_v63 = vadd.f32 %v1488_v61, %v2114_v50  ;;  %v833_v0 = vadd.f32 %v1536_v62, %v2114_v50  ;;  %v915_v1 = vmax.f32 %v816_v59, 0.0  ;;  %v931_v2 = vmax.f32 %v832_v60, 0.0 }
 0x157   : > { %v916_v3 = vmax.f32 %v817_v63, 0.0  ;;  %v932_v4 = vmax.f32 %v833_v0, 0.0  ;;  %v1489_v5 = vpop.f32.mrb[4].mxu0  ;;  %v1537_v6 = vpop.f32.mrb[4].mxu1 }
 0x158   : > { %v1490_v7 = vpop.f32.mrb[5].mxu0  ;;  %v1538_v8 = vpop.f32.mrb[5].mxu1 }
 0x159   : > { %v1375_v9 = vpack.c.bf16 %v916_v3, %v915_v1  ;;  %v1415_v10 = vpack.c.bf16 %v932_v4, %v931_v2  ;;  %v1491_v11 = vadd.f32 %v1490_v7, %v1489_v5  ;;  %v1539_v12 = vadd.f32 %v1538_v8, %v1537_v6  ;;  %v1492_v13 = vpop.f32.mrb[6].mxu0  ;;  %v1540_v14 = vpop.f32.mrb[6].mxu1 }
 0x15a   : > { %v1493_v15 = vpop.f32.mrb[7].mxu0  ;;  %v1541_v16 = vpop.f32.mrb[7].mxu1 }
 0x15b   : > { %1376 = vst [vmem:[%s2121_s9] sm:$0xff] %v1375_v9   ;;  %1459 = vst [vmem:[%s2121_s9 + $0x40] sm:$0xff] %v1415_v10   ;;  %v818_v17 = vadd.f32 %v1491_v11, %v2114_v50  ;;  %v834_v18 = vadd.f32 %v1539_v12, %v2114_v50  ;;  %v1494_v19 = vadd.f32 %v1493_v15, %v1492_v13 }
 0x15c   : > { %v1542_v20 = vadd.f32 %v1541_v16, %v1540_v14 }
 0x15d   : > { %v819_v21 = vadd.f32 %v1494_v19, %v2114_v50  ;;  %v917_v23 = vmax.f32 %v818_v17, 0.0  ;;  %v933_v24 = vmax.f32 %v834_v18, 0.0 }
 0x15e   : > { %v835_v22 = vadd.f32 %v1542_v20, %v2114_v50 }
 0x15f   : > { %v918_v25 = vmax.f32 %v819_v21, 0.0  ;;  %v1495_v27 = vpop.f32.mrb[8].mxu0  ;;  %v1543_v28 = vpop.f32.mrb[8].mxu1 }
 0x160   : > { %v934_v26 = vmax.f32 %v835_v22, 0.0  ;;  %v1496_v29 = vpop.f32.mrb[9].mxu0  ;;  %v1544_v30 = vpop.f32.mrb[9].mxu1 }
 0x161   : > { %v1380_v31 = vpack.c.bf16 %v918_v25, %v917_v23  ;;  %v1497_v33 = vadd.f32 %v1496_v29, %v1495_v27  ;;  %v1545_v34 = vadd.f32 %v1544_v30, %v1543_v28  ;;  %v1498_v35 = vpop.f32.mrb[10].mxu0  ;;  %v1546_v36 = vpop.f32.mrb[10].mxu1 }
 0x162   : > { %v1420_v32 = vpack.c.bf16 %v934_v26, %v933_v24  ;;  %v1499_v37 = vpop.f32.mrb[11].mxu0  ;;  %v1547_v38 = vpop.f32.mrb[11].mxu1 }
 0x163   : > { %1452 = vst [vmem:[%s2121_s9 + $0x8] sm:$0xff] %v1380_v31   ;;  %v820_v39 = vadd.f32 %v1497_v33, %v2114_v50  ;;  %v836_v40 = vadd.f32 %v1545_v34, %v2114_v50  ;;  %v1500_v41 = vadd.f32 %v1499_v37, %v1498_v35  ;;  %v1548_v42 = vadd.f32 %v1547_v38, %v1546_v36 }
 0x164   : > { %1460 = vst [vmem:[%s2121_s9 + $0x48] sm:$0xff] %v1420_v32  }
 0x165   : > { %v821_v43 = vadd.f32 %v1500_v41, %v2114_v50  ;;  %v837_v44 = vadd.f32 %v1548_v42, %v2114_v50  ;;  %v919_v45 = vmax.f32 %v820_v39, 0.0  ;;  %v935_v46 = vmax.f32 %v836_v40, 0.0 }
 0x167   : > { %v920_v47 = vmax.f32 %v821_v43, 0.0  ;;  %v936_v48 = vmax.f32 %v837_v44, 0.0  ;;  %v1501_v49 = vpop.f32.mrb[12].mxu0  ;;  %v1549_v51 = vpop.f32.mrb[12].mxu1 }
 0x168   : > { %v1502_v52 = vpop.f32.mrb[13].mxu0  ;;  %v1550_v53 = vpop.f32.mrb[13].mxu1 }
 0x169   : > { %v1385_v54 = vpack.c.bf16 %v920_v47, %v919_v45  ;;  %v1425_v55 = vpack.c.bf16 %v936_v48, %v935_v46  ;;  %v1503_v56 = vadd.f32 %v1502_v52, %v1501_v49  ;;  %v1551_v57 = vadd.f32 %v1550_v53, %v1549_v51  ;;  %v1504_v58 = vpop.f32.mrb[14].mxu0  ;;  %v1552_v59 = vpop.f32.mrb[14].mxu1 }
 0x16a   : > { %v1505_v60 = vpop.f32.mrb[15].mxu0  ;;  %v1553_v61 = vpop.f32.mrb[15].mxu1 }
 0x16b   : > { %1453 = vst [vmem:[%s2121_s9 + $0x10] sm:$0xff] %v1385_v54   ;;  %1461 = vst [vmem:[%s2121_s9 + $0x50] sm:$0xff] %v1425_v55   ;;  %v822_v62 = vadd.f32 %v1503_v56, %v2114_v50  ;;  %v838_v63 = vadd.f32 %v1551_v57, %v2114_v50  ;;  %v1506_v0 = vadd.f32 %v1505_v60, %v1504_v58 }
 0x16c   : > { %v1554_v1 = vadd.f32 %v1553_v61, %v1552_v59 }
 0x16d   : > { %v823_v2 = vadd.f32 %v1506_v0, %v2114_v50  ;;  %v921_v4 = vmax.f32 %v822_v62, 0.0  ;;  %v937_v5 = vmax.f32 %v838_v63, 0.0 }
 0x16e   : > { %v839_v3 = vadd.f32 %v1554_v1, %v2114_v50 }
 0x16f   : > { %v922_v6 = vmax.f32 %v823_v2, 0.0  ;;  %v1507_v8 = vpop.f32.mrb[16].mxu0  ;;  %v1555_v9 = vpop.f32.mrb[16].mxu1 }
 0x170   : > { %v938_v7 = vmax.f32 %v839_v3, 0.0  ;;  %v1508_v10 = vpop.f32.mrb[17].mxu0  ;;  %v1556_v11 = vpop.f32.mrb[17].mxu1 }
 0x171   : > { %v1390_v12 = vpack.c.bf16 %v922_v6, %v921_v4  ;;  %v1509_v14 = vadd.f32 %v1508_v10, %v1507_v8  ;;  %v1557_v15 = vadd.f32 %v1556_v11, %v1555_v9  ;;  %v1510_v16 = vpop.f32.mrb[18].mxu0  ;;  %v1558_v17 = vpop.f32.mrb[18].mxu1 }
 0x172   : > { %v1430_v13 = vpack.c.bf16 %v938_v7, %v937_v5  ;;  %v1511_v18 = vpop.f32.mrb[19].mxu0  ;;  %v1559_v19 = vpop.f32.mrb[19].mxu1 }
 0x173   : > { %1454 = vst [vmem:[%s2121_s9 + $0x18] sm:$0xff] %v1390_v12   ;;  %v824_v20 = vadd.f32 %v1509_v14, %v2114_v50  ;;  %v840_v21 = vadd.f32 %v1557_v15, %v2114_v50  ;;  %v1512_v22 = vadd.f32 %v1511_v18, %v1510_v16  ;;  %v1560_v23 = vadd.f32 %v1559_v19, %v1558_v17 }
 0x174   : > { %1462 = vst [vmem:[%s2121_s9 + $0x58] sm:$0xff] %v1430_v13  }
 0x175   : > { %v825_v24 = vadd.f32 %v1512_v22, %v2114_v50  ;;  %v841_v25 = vadd.f32 %v1560_v23, %v2114_v50  ;;  %v923_v26 = vmax.f32 %v824_v20, 0.0  ;;  %v939_v27 = vmax.f32 %v840_v21, 0.0 }
 0x177   : > { %v924_v28 = vmax.f32 %v825_v24, 0.0  ;;  %v940_v29 = vmax.f32 %v841_v25, 0.0  ;;  %v1513_v30 = vpop.f32.mrb[20].mxu0  ;;  %v1561_v31 = vpop.f32.mrb[20].mxu1 }
 0x178   : > { %v1514_v32 = vpop.f32.mrb[21].mxu0  ;;  %v1562_v33 = vpop.f32.mrb[21].mxu1 }
 0x179   : > { %v1395_v34 = vpack.c.bf16 %v924_v28, %v923_v26  ;;  %v1435_v35 = vpack.c.bf16 %v940_v29, %v939_v27  ;;  %v1515_v36 = vadd.f32 %v1514_v32, %v1513_v30  ;;  %v1563_v37 = vadd.f32 %v1562_v33, %v1561_v31  ;;  %v1516_v38 = vpop.f32.mrb[22].mxu0  ;;  %v1564_v39 = vpop.f32.mrb[22].mxu1 }
 0x17a   : > { %v1517_v40 = vpop.f32.mrb[23].mxu0  ;;  %v1565_v41 = vpop.f32.mrb[23].mxu1 }
 0x17b   : > { %1455 = vst [vmem:[%s2121_s9 + $0x20] sm:$0xff] %v1395_v34   ;;  %1463 = vst [vmem:[%s2121_s9 + $0x60] sm:$0xff] %v1435_v35   ;;  %v826_v42 = vadd.f32 %v1515_v36, %v2114_v50  ;;  %v842_v43 = vadd.f32 %v1563_v37, %v2114_v50  ;;  %v1518_v44 = vadd.f32 %v1517_v40, %v1516_v38 }
 0x17c   : > { %v1566_v45 = vadd.f32 %v1565_v41, %v1564_v39 }
 0x17d   : > { %v827_v46 = vadd.f32 %v1518_v44, %v2114_v50  ;;  %v925_v48 = vmax.f32 %v826_v42, 0.0  ;;  %v941_v49 = vmax.f32 %v842_v43, 0.0 }
 0x17e   : > { %v843_v47 = vadd.f32 %v1566_v45, %v2114_v50 }
 0x17f   : > { %v926_v51 = vmax.f32 %v827_v46, 0.0  ;;  %v1519_v53 = vpop.f32.mrb[24].mxu0  ;;  %v1567_v54 = vpop.f32.mrb[24].mxu1 }
 0x180   : > { %v942_v52 = vmax.f32 %v843_v47, 0.0  ;;  %v1520_v55 = vpop.f32.mrb[25].mxu0  ;;  %v1568_v56 = vpop.f32.mrb[25].mxu1 }
 0x181   : > { %v1400_v57 = vpack.c.bf16 %v926_v51, %v925_v48  ;;  %v1521_v59 = vadd.f32 %v1520_v55, %v1519_v53  ;;  %v1569_v60 = vadd.f32 %v1568_v56, %v1567_v54  ;;  %v1522_v61 = vpop.f32.mrb[26].mxu0  ;;  %v1570_v62 = vpop.f32.mrb[26].mxu1 }
 0x182   : > { %v1440_v58 = vpack.c.bf16 %v942_v52, %v941_v49  ;;  %v1523_v63 = vpop.f32.mrb[27].mxu0  ;;  %v1571_v0 = vpop.f32.mrb[27].mxu1 }
 0x183   : > { %1456 = vst [vmem:[%s2121_s9 + $0x28] sm:$0xff] %v1400_v57   ;;  %v828_v1 = vadd.f32 %v1521_v59, %v2114_v50  ;;  %v844_v2 = vadd.f32 %v1569_v60, %v2114_v50  ;;  %v1524_v3 = vadd.f32 %v1523_v63, %v1522_v61  ;;  %v1572_v4 = vadd.f32 %v1571_v0, %v1570_v62 }
 0x184   : > { %1464 = vst [vmem:[%s2121_s9 + $0x68] sm:$0xff] %v1440_v58  }
 0x185   : > { %v829_v5 = vadd.f32 %v1524_v3, %v2114_v50  ;;  %v845_v6 = vadd.f32 %v1572_v4, %v2114_v50  ;;  %v927_v7 = vmax.f32 %v828_v1, 0.0  ;;  %v943_v8 = vmax.f32 %v844_v2, 0.0 }
 0x187   : > { %v928_v9 = vmax.f32 %v829_v5, 0.0  ;;  %v944_v10 = vmax.f32 %v845_v6, 0.0  ;;  %v1525_v11 = vpop.f32.mrb[28].mxu0  ;;  %v1573_v12 = vpop.f32.mrb[28].mxu1 }
 0x188   : > { %v1526_v13 = vpop.f32.mrb[29].mxu0  ;;  %v1574_v14 = vpop.f32.mrb[29].mxu1 }
 0x189   : > { %v1405_v15 = vpack.c.bf16 %v928_v9, %v927_v7  ;;  %v1445_v16 = vpack.c.bf16 %v944_v10, %v943_v8  ;;  %v1527_v17 = vadd.f32 %v1526_v13, %v1525_v11  ;;  %v1575_v18 = vadd.f32 %v1574_v14, %v1573_v12  ;;  %v1528_v19 = vpop.f32.mrb[30].mxu0  ;;  %v1576_v20 = vpop.f32.mrb[30].mxu1 }
 0x18a   : > { %v1529_v21 = vpop.f32.mrb[31].mxu0  ;;  %v1577_v22 = vpop.f32.mrb[31].mxu1 }
 0x18b   : > { %1457 = vst [vmem:[%s2121_s9 + $0x30] sm:$0xff] %v1405_v15   ;;  %1465 = vst [vmem:[%s2121_s9 + $0x70] sm:$0xff] %v1445_v16   ;;  %v830_v23 = vadd.f32 %v1527_v17, %v2114_v50  ;;  %v846_v24 = vadd.f32 %v1575_v18, %v2114_v50  ;;  %v1530_v25 = vadd.f32 %v1529_v21, %v1528_v19 }
 0x18c   : > { %v1578_v26 = vadd.f32 %v1577_v22, %v1576_v20 }
 0x18d   : > { %v831_v27 = vadd.f32 %v1530_v25, %v2114_v50  ;;  %v929_v29 = vmax.f32 %v830_v23, 0.0  ;;  %v945_v30 = vmax.f32 %v846_v24, 0.0 }
 0x18e   : > { %v847_v28 = vadd.f32 %v1578_v26, %v2114_v50 }
 0x18f   : > { %v930_v31 = vmax.f32 %v831_v27, 0.0 }
 0x190   : > { %v946_v32 = vmax.f32 %v847_v28, 0.0 }
 0x191   : > { %v1410_v33 = vpack.c.bf16 %v930_v31, %v929_v29 }
 0x192   : > { %v1450_v34 = vpack.c.bf16 %v946_v32, %v945_v30 }
 0x193   : > { %1458 = vst [vmem:[%s2121_s9 + $0x38] sm:$0xff] %v1410_v33  }
 0x194   : > { %1466 = vst [vmem:[%s2121_s9 + $0x78] sm:$0xff] %v1450_v34  }
 0x195   : > { %1809 = shalt.err (!%p1806_p5)
}
 0x196   : > { %s1810_s29 = scalar_lea.hbm %s2170_s7, 2048  ;;  %s1814_s20 = scalar_lea.hbm %s2226_s3, 4096 }
 0x197   : > { %p1811_p9 = scmp.ne.s32.totalorder %s2170_s7, %s1810_s29  ;;  %p1815_p3 = scmp.lt.u32.totalorder %s2170_s7, %s2226_s3 }
 0x198   : > { %p1816_p7 = scmp.lt.u32.totalorder %s1814_s20, %s1810_s29  ;;  %p1818_p4 = scmp.lt.u32.totalorder %s1810_s29, %s2170_s7 }
 0x199   : > { %p1812_p1 = pnand %p1811_p9, %p2009_p10 }
 0x19a   : > { %p1817_p13 = por %p1816_p7, %p1815_p3 }
 0x19b   : > { %p1813_p2 = pneg %p1812_p1 }
 0x19c   : > { %p1819_p6 = por %p1818_p4, %p1817_p13 }
 0x19e   : > { %p1820_p8 = pnand %p1819_p6, %p1813_p2 }
 0x1a0   : > { %1823 = shalt.err (!%p1820_p8)
}
 0x1a1   : > { %s1891_s9 = smov 64   ;;  %s1892_s10 = smov 4  }
 0x1a2   : > { %1601 = dma.vmem_to_hbm [thread:$0]  (%p2009_p10), %s2172_s11, 2048, %s2170_s7, %s1108_s15, %s1891_s9, %s1891_s9, %s1892_s10  }
 0x1a3 PF: > { %s1137_s18 = sand.u32 1, %s1862_s12   ;;  %p2244_p12 = scmp.ne.s32.totalorder %s2234_s23, 0 }
 0x1a4   : > { %p2245_p11 = scmp.ge.s32.totalorder %s1882_s17, 2  ;;  %s1138_s26 = scalar_lea.sflag [#allocation5], %s1137_s18 }
 0x1a6   : > { %p1612_p0 = pnand %p2245_p11, %p2244_p12 }
 0x1a8   : > { %1857 = dma.done.wait (!%p1612_p0), %s1138_s26, 2048  }
 0x1a9   : > { %1859 = vsyncadd (!%p1612_p0), %s1138_s26, 4294965248  ;;  %s20_s17 = sadd.s32 1, %s1882_s17   ;;  %s2246_s12 = smov %s1866_s13 }
 0x1aa   : > { %p17_p5 = scmp.ge.s32.totalorder %s20_s17, 4   ;;  %s2247_s13 = smov %s1870_s14 }
 0x1ab   : > { %s2248_s14 = smov %s2018_s5  ;;  %s2249_s15 = smov %s1878_s16 }
 0x1ac   : > { %s2250_s16 = smov %s2252_s28  ;;  %19 = sbr.rel (!%p17_p5) target bundleno = 7 (0x7), region = 93 }
 0x1b3   :  { %1143 = vsyncpa [#allocation4], 1 }
 0x1b4   :  { %1145 = vsyncpa [#allocation4 + $0x1], 1 }
 0x1b5   :  { %1146 = vsyncpa [#allocation7], 1 }
 0x1b6   :  { %1147 = vsyncpa [#allocation5], 1 }
 0x1b7   :  { %1149 = vsyncpa [#allocation5 + $0x1], 1 }

</bundles_post_ra>
